<compile_context>
chip_gen: v5e
topology: v5e:2x2
jax: 0.10.0
libtpu: 0.0.40
codegen_flags: <defaults>
</compile_context>

<pallas_src>
import functools

import jax
import jax.numpy as jnp
from jax.experimental import pallas as pl
from jax.experimental.pallas import tpu as pltpu


def _round_up(x: int, m: int) -> int:
    return (x + m - 1) // m * m


def _fused_linear_kernel(x_ref, w_ref, b_ref, o_ref):
    # out = x @ W_fused + b_fused   (single MXU pass, f32 accumulation)
    o = jnp.dot(x_ref[...], w_ref[...], preferred_element_type=jnp.float32)
    o = o + b_ref[...]  # b is (1, out) f32 -> broadcasts over batch rows
    o_ref[...] = o.astype(o_ref.dtype)


@functools.partial(jax.jit, static_argnames=("tile_b", "compute_dtype"))
def discriminator_forward(p, w1, b1, w2, b2, *, tile_b=1024, compute_dtype=None):
    """p: (B, input_size); w1: (input_size, hidden); b1: (1, hidden);
    w2: (hidden, output); b2: (1, output).

    compute_dtype: optional narrower dtype (e.g. jnp.bfloat16) for x and the
    fused weight; accumulation and bias add stay in f32.
    """
    B, in_size = p.shape
    out_size = w2.shape[1]
    out_dtype = p.dtype

    # --- Algebraic fusion of the two linears (exact math, done in f32). ---
    w1f = w1.astype(jnp.float32)
    w2f = w2.astype(jnp.float32)
    w_fused = jnp.dot(w1f, w2f)                                              # (in, out)
    b_fused = jnp.dot(b1.astype(jnp.float32), w2f) + b2.astype(jnp.float32)  # (1, out)

    x = p
    if compute_dtype is not None:
        x = x.astype(compute_dtype)
        w_fused = w_fused.astype(compute_dtype)
    # b_fused stays f32 (v5e VPU has no bf16 VALU).

    # --- Batch tiling: tile_b rows per grid step (multiple of 8 sublanes). ---
    tile_b = max(8, min(_round_up(int(tile_b), 8), _round_up(B, 8)))
    b_pad = _round_up(B, tile_b)
    if b_pad != B:
        x = jnp.pad(x, ((0, b_pad - B), (0, 0)))
    grid = (b_pad // tile_b,)

    x_bytes = x.dtype.itemsize
    w_bytes = w_fused.dtype.itemsize
    cost = pl.CostEstimate(
        flops=2 * b_pad * in_size * out_size,
        transcendentals=0,
        bytes_accessed=(b_pad * in_size * x_bytes
                        + in_size * out_size * w_bytes
                        + out_size * 4
                        + b_pad * out_size * jnp.dtype(out_dtype).itemsize),
    )

    out = pl.pallas_call(
        _fused_linear_kernel,
        out_shape=jax.ShapeDtypeStruct((b_pad, out_size), out_dtype),
        grid_spec=pl.GridSpec(
            grid=grid,
            in_specs=[
                pl.BlockSpec((tile_b, in_size), lambda i: (i, 0)),    # x tile
                pl.BlockSpec((in_size, out_size), lambda i: (0, 0)),  # W_fused (resident)
                pl.BlockSpec((1, out_size), lambda i: (0, 0)),        # b_fused (resident)
            ],
            out_specs=pl.BlockSpec((tile_b, out_size), lambda i: (i, 0)),
        ),
        compiler_params=pltpu.CompilerParams(
            # Batch-parallel: sharded across both TensorCores on v7x.
            dimension_semantics=("parallel",),
        ),
        cost_estimate=cost,
    )(x, w_fused, b_fused)

    if b_pad != B:
        out = out[:B]
    return out


def init_discriminator_params(key, input_size, hidden_size, output_size,
                              dtype=jnp.float32):
    # Mimics nn.Linear default init: U(-1/sqrt(fan_in), 1/sqrt(fan_in)).
    k1, k2, k3, k4 = jax.random.split(key, 4)
    bound1 = 1.0 / jnp.sqrt(input_size)
    bound2 = 1.0 / jnp.sqrt(hidden_size)
    # Stored transposed relative to PyTorch (out, in) layout -> (in, out).
    w1 = jax.random.uniform(k1, (input_size, hidden_size), dtype, -bound1, bound1)
    b1 = jax.random.uniform(k2, (1, hidden_size), dtype, -bound1, bound1)
    w2 = jax.random.uniform(k3, (hidden_size, output_size), dtype, -bound2, bound2)
    b2 = jax.random.uniform(k4, (1, output_size), dtype, -bound2, bound2)
    return w1, b1, w2, b2


if __name__ == "__main__":
    input_size, hidden_size, output_size = 16, 32, 8

    key = jax.random.PRNGKey(0)
    k_params, k_x1, k_x2 = jax.random.split(key, 3)
    w1, b1, w2, b2 = init_discriminator_params(
        k_params, input_size, hidden_size, output_size
    )

    # --- Check 1: small batch, single tile (f32). ---
    batch = 8
    p = jax.random.normal(k_x1, (batch, input_size), jnp.float32)
    out = jax.block_until_ready(discriminator_forward(p, w1, b1, w2, b2))
    ref = (p @ w1 + b1) @ w2 + b2
    assert out.shape == (batch, output_size)
    assert jnp.allclose(out, ref, atol=1e-5, rtol=1e-5)

    # --- Check 2: batch not a multiple of the tile -> padded multi-step grid. ---
    batch2 = 20
    p2 = jax.random.normal(k_x2, (batch2, input_size), jnp.float32)
    out2 = jax.block_until_ready(
        discriminator_forward(p2, w1, b1, w2, b2, tile_b=8)
    )
    ref2 = (p2 @ w1 + b1) @ w2 + b2
    assert out2.shape == (batch2, output_size)
    assert jnp.allclose(out2, ref2, atol=1e-5, rtol=1e-5)

    # --- Check 3: bf16 compute path (f32 accumulation), looser tolerance. ---
    out3 = jax.block_until_ready(
        discriminator_forward(p2, w1, b1, w2, b2, tile_b=8,
                              compute_dtype=jnp.bfloat16)
    )
    assert out3.shape == (batch2, output_size)
    assert jnp.allclose(out3, ref2, atol=5e-2, rtol=5e-2)

    print("KERNEL_OK")
</pallas_src>

<mosaic_0001>
module attributes {stable_mosaic.version = 11 : i64} {
  func.func @_fused_linear_kernel(%arg0: i32, %arg1: memref<8x16xf32, #tpu.memory_space<vmem>>, %arg2: memref<16x8xf32, #tpu.memory_space<vmem>>, %arg3: memref<1x8xf32, #tpu.memory_space<vmem>>, %arg4: memref<8x8xf32, #tpu.memory_space<vmem>>) attributes {dimension_semantics = [#tpu.dimension_semantics<parallel>], iteration_bounds = array<i64: 1>, scalar_prefetch = 0 : i64, scratch_operands = 0 : i64, tpu.core_type = #tpu.core_type<tc>, window_params = [{transform_indices = @transform_0, window_bounds = array<i64: 8, 16>}, {pipeline_mode = #tpu.pipeline_mode<synchronous>, transform_indices = @transform_1, window_bounds = array<i64: 16, 8>}, {pipeline_mode = #tpu.pipeline_mode<synchronous>, transform_indices = @transform_2, window_bounds = array<i64: 1, 8>}, {transform_indices = @transform_3, window_bounds = array<i64: 8, 8>}]} {
    %c0 = arith.constant 0 : index
    %c0_0 = arith.constant 0 : index
    %0 = vector.load %arg1[%c0, %c0_0] : memref<8x16xf32, #tpu.memory_space<vmem>>, vector<8x16xf32>
    %c0_1 = arith.constant 0 : index
    %c0_2 = arith.constant 0 : index
    %1 = vector.load %arg2[%c0_1, %c0_2] : memref<16x8xf32, #tpu.memory_space<vmem>>, vector<16x8xf32>
    %cst = arith.constant dense<0.000000e+00> : vector<8x8xf32>
    %2 = tpu.matmul %0, %1, %cst {dimension_numbers = #tpu.dot_dimension_numbers<[1], [0], [0], [1], [0, 0, 1, 1], [], []>} : vector<8x16xf32>, vector<16x8xf32>, vector<8x8xf32> -> vector<8x8xf32>
    %c0_3 = arith.constant 0 : index
    %c0_4 = arith.constant 0 : index
    %3 = vector.load %arg3[%c0_3, %c0_4] : memref<1x8xf32, #tpu.memory_space<vmem>>, vector<1x8xf32>
    %4 = vector.broadcast %3 : vector<1x8xf32> to vector<8x8xf32>
    %5 = arith.addf %2, %4 : vector<8x8xf32>
    %c0_5 = arith.constant 0 : index
    %c0_6 = arith.constant 0 : index
    %6 = vector.load %arg4[%c0_5, %c0_6] : memref<8x8xf32, #tpu.memory_space<vmem>>, vector<8x8xf32>
    tpu.vector_store %arg4[%c0_5, %c0_6], %5 {strides = array<i32>} : memref<8x8xf32, #tpu.memory_space<vmem>>, vector<8x8xf32>,
    return
  }
  func.func @transform_0(%arg0: i32) -> (i32, i32) {
    %c0_i32 = arith.constant 0 : i32
    %c0_i32_0 = arith.constant 0 : i32
    return %arg0, %c0_i32 : i32, i32
  }
  func.func @transform_1(%arg0: i32) -> (i32, i32) {
    %c0_i32 = arith.constant 0 : i32
    %c0_i32_0 = arith.constant 0 : i32
    %c0_i32_1 = arith.constant 0 : i32
    return %c0_i32, %c0_i32_0 : i32, i32
  }
  func.func @transform_2(%arg0: i32) -> (i32, i32) {
    %c0_i32 = arith.constant 0 : i32
    %c0_i32_0 = arith.constant 0 : i32
    %c0_i32_1 = arith.constant 0 : i32
    return %c0_i32, %c0_i32_0 : i32, i32
  }
  func.func @transform_3(%arg0: i32) -> (i32, i32) {
    %c0_i32 = arith.constant 0 : i32
    %c0_i32_0 = arith.constant 0 : i32
    return %arg0, %c0_i32 : i32, i32
  }
}

</mosaic_0001>

<bundles_post_ra>
// kernel: discriminator_forward.1
= control target key start
LH: loop header
LB: loop body
LE: loop exit
PB: predicated region body
PF: predicated region fallthrough
CT: control target
= control target key end

     0   :  { %vm22_vm0 = vcmask 130048   ;;  %s129_s0 = inlined_call_operand.vmem [shape: f32[8,16], index: 0, kind: input, shape index: {}]   ;;  %s130_s1 = inlined_call_operand.vmem [shape: f32[16,8], index: 1, kind: input, shape index: {}]   ;;  %s131_s2 = inlined_call_operand.vmem [shape: f32[1,8], index: 2, kind: input, shape index: {}]   ;;  %s132_s3 = inlined_call_operand.hbm [shape: f32[8,8], index: 3, kind: output, shape index: {}]  }
   0x1   :  { %v17_v0 = vld [vmem:[%s130_s1 + $0x8] sm:$0xff]  ;;  %v16_v1 = vld [vmem:[%s130_s1] sm:$0xff] }
   0x2   :  { %40 = vmatpush.msra.mxu0 %v17_v0  ;;  %v15_v2 = vld [vmem:[%s129_s0] sm:$0xff] }
   0x3   :  { %8 = vsyncpa [#allocation3], 0  ;;  %v66_v3 = vld [vmem:[%s131_s2] ss:$0 sm:$0xff]  ;;  %s93_s20 = smov [#allocation2]   ;;  %s55_s24 = sshll.u32 %s132_s3, 4  ;;  %s56_s24 = int_to_ptr.hbm [resolvable:$true] %s55_s24 }
   0x4   :  { %41 = vmatpush.msra.mxu0 %v16_v1  ;;  %s53_s21 = sshll.u32 %s93_s20, 4  ;;  %vm46_vm1 = vcmask 64512   ;;  %s54_s21 = int_to_ptr.vmem [resolvable:$true] %s53_s21 }
   0x5   :  { %64 = vmatmul.msk.f32.vlgmr.msra.gmra.mxu0 %vm22_vm0, %v15_v2 }
  0x82   :  { %v43_v4 = vpop.f32.mrf.mxu0 }
  0x83   :  { %v44_v5 = vadd.f32 %v66_v3, %v43_v4 }
  0x85   :  { %47 = vst.msk [vmem:[#allocation2] sm:$0xff] %vm46_vm1, %v44_v5 }
  0x86   :  { %58 = dma.vmem_to_hbm [thread:$0]  %s54_s21, 128, %s56_s24, [#allocation3]  }
  0x87   :  { %91 = dma.done.wait [#allocation3], 128  }
  0x88   :  { %92 = vsyncadd [#allocation3], 4294967168 }
  0x89   :  { %63 = vsyncpa [#allocation3], 1 }

</bundles_post_ra>
